<compile_context>
chip_gen: v6e
topology: v6e:2x2x1
jax: 0.10.0
libtpu: 0.0.40
codegen_flags: <defaults>
</compile_context>

<pallas_src>
import functools

import jax
import jax.numpy as jnp
from jax.experimental import pallas as pl
from jax.experimental.pallas import tpu as pltpu


def _round_up(n, m):
    return ((n + m - 1) // m) * m


def _mlp_kernel(x_ref, w1_ref, b1_ref, w2_ref, b2_ref, w3_ref, b3_ref, o_ref,
                *, compute_dtype):
    # x_ref: (tile, D) batch tile; weights/biases are full arrays resident in VMEM.
    x = x_ref[...].astype(compute_dtype)

    # Linear(input_size, 64) + ReLU
    h1 = jnp.dot(x, w1_ref[...].astype(compute_dtype),
                 preferred_element_type=jnp.float32) + b1_ref[...]
    h1 = jnp.maximum(h1, 0.0)

    # Linear(64, 32) + ReLU
    h2 = jnp.dot(h1.astype(compute_dtype), w2_ref[...].astype(compute_dtype),
                 preferred_element_type=jnp.float32) + b2_ref[...]
    h2 = jnp.maximum(h2, 0.0)

    # Linear(32, num_classes)  -> logits
    out = jnp.dot(h2.astype(compute_dtype), w3_ref[...].astype(compute_dtype),
                  preferred_element_type=jnp.float32) + b3_ref[...]
    o_ref[...] = out.astype(o_ref.dtype)


def mlp_chord_classifier(x, params, *, batch_tile=1024, compute_dtype=jnp.float32):
    """Forward pass of MLPChordClassifier.

    x: (B, input_size) float32
    params: dict with w1 (D,64), b1 (1,64), w2 (64,32), b2 (1,32),
            w3 (32,C), b3 (1,C)   (PyTorch Linear weights pre-transposed to (in,out))
    returns: (B, C) float32 logits
    """
    B, D = x.shape
    C = params["w3"].shape[1]

    # Batch tile: multiple of 8 sublanes (fp32), large enough to amortize the
    # ~0.35us per-grid-step overhead, but capped so the grid keeps >=2 steps
    # whenever possible (work shards across v7x's two TensorCores).
    tile = max(8, min(_round_up(batch_tile, 8), _round_up(pl.cdiv(B, 2), 8)))
    grid = (pl.cdiv(B, tile),)  # ragged last block: OOB rows read garbage,
                                # their output rows are dropped on store.

    kernel = functools.partial(_mlp_kernel, compute_dtype=compute_dtype)

    def batch_map(i):
        return (i, 0)

    def full_map(i):
        return (0, 0)

    w1, b1 = params["w1"], params["b1"]
    w2, b2 = params["w2"], params["b2"]
    w3, b3 = params["w3"], params["b3"]

    return pl.pallas_call(
        kernel,
        out_shape=jax.ShapeDtypeStruct((B, C), jnp.float32),
        grid=grid,
        in_specs=[
            pl.BlockSpec((tile, D), batch_map),      # streaming input tile
            pl.BlockSpec(w1.shape, full_map),        # grid-invariant, VMEM-resident
            pl.BlockSpec(b1.shape, full_map),
            pl.BlockSpec(w2.shape, full_map),
            pl.BlockSpec(b2.shape, full_map),
            pl.BlockSpec(w3.shape, full_map),
            pl.BlockSpec(b3.shape, full_map),
        ],
        out_specs=pl.BlockSpec((tile, C), batch_map),  # last dim == full C (legal, unpadded)
        compiler_params=pltpu.CompilerParams(
            dimension_semantics=("parallel",),
        ),
    )(x, w1, b1, w2, b2, w3, b3)


def init_params(key, input_size, num_classes):
    """Deterministic synthetic params matching the nn.Linear shapes.

    PyTorch Linear stores W as (out, in); we store the transpose (in, out).
    """
    k1, k2, k3, k4, k5, k6 = jax.random.split(key, 6)
    scale1 = 1.0 / jnp.sqrt(input_size)
    scale2 = 1.0 / jnp.sqrt(64.0)
    scale3 = 1.0 / jnp.sqrt(32.0)
    return {
        "w1": jax.random.uniform(k1, (input_size, 64), jnp.float32, -scale1, scale1),
        "b1": jax.random.uniform(k2, (1, 64), jnp.float32, -scale1, scale1),
        "w2": jax.random.uniform(k3, (64, 32), jnp.float32, -scale2, scale2),
        "b2": jax.random.uniform(k4, (1, 32), jnp.float32, -scale2, scale2),
        "w3": jax.random.uniform(k5, (32, num_classes), jnp.float32, -scale3, scale3),
        "b3": jax.random.uniform(k6, (1, num_classes), jnp.float32, -scale3, scale3),
    }


def reference_mlp(x, params):
    h1 = jnp.maximum(x @ params["w1"] + params["b1"], 0.0)
    h2 = jnp.maximum(h1 @ params["w2"] + params["b2"], 0.0)
    return h2 @ params["w3"] + params["b3"]


if __name__ == "__main__":
    key = jax.random.PRNGKey(0)
    kx, kp, kx2, kx3 = jax.random.split(key, 4)

    input_size = 128   # e.g. feature vector length
    num_classes = 24   # e.g. 24 major/minor chords
    params = init_params(kp, input_size, num_classes)

    fwd = jax.jit(mlp_chord_classifier)

    # Small aligned batch (single grid step).
    x = jax.random.normal(kx, (8, input_size), jnp.float32)
    out = jax.block_until_ready(fwd(x, params))
    ref = reference_mlp(x, params)
    assert out.shape == (8, num_classes)
    assert jnp.allclose(out, ref, atol=1e-4, rtol=1e-4), "mismatch (small batch)"

    # Batch not a multiple of 8: ragged last block, 2 grid steps, no padding anywhere.
    x2 = jax.random.normal(kx2, (13, input_size), jnp.float32)
    out2 = jax.block_until_ready(fwd(x2, params))
    ref2 = reference_mlp(x2, params)
    assert out2.shape == (13, num_classes)
    assert jnp.allclose(out2, ref2, atol=1e-4, rtol=1e-4), "mismatch (ragged batch)"

    # Larger non-divisible batch with an explicit small tile (multi-step pipeline).
    fwd_tiled = jax.jit(functools.partial(mlp_chord_classifier, batch_tile=64))
    x3 = jax.random.normal(kx3, (200, input_size), jnp.float32)
    out3 = jax.block_until_ready(fwd_tiled(x3, params))
    ref3 = reference_mlp(x3, params)
    assert out3.shape == (200, num_classes)
    assert jnp.allclose(out3, ref3, atol=1e-4, rtol=1e-4), "mismatch (tiled batch)"

    print("KERNEL_OK")
</pallas_src>

<mosaic_0001>
module attributes {stable_mosaic.version = 11 : i64} {
  func.func @_mlp_kernel(%arg0: i32, %arg1: memref<8x128xf32, #tpu.memory_space<vmem>>, %arg2: memref<128x64xf32, #tpu.memory_space<vmem>>, %arg3: memref<1x64xf32, #tpu.memory_space<vmem>>, %arg4: memref<64x32xf32, #tpu.memory_space<vmem>>, %arg5: memref<1x32xf32, #tpu.memory_space<vmem>>, %arg6: memref<32x24xf32, #tpu.memory_space<vmem>>, %arg7: memref<1x24xf32, #tpu.memory_space<vmem>>, %arg8: memref<8x24xf32, #tpu.memory_space<vmem>>) attributes {dimension_semantics = [#tpu.dimension_semantics<parallel>], iteration_bounds = array<i64: 1>, scalar_prefetch = 0 : i64, scratch_operands = 0 : i64, tpu.core_type = #tpu.core_type<tc>, window_params = [{transform_indices = @transform_0, window_bounds = array<i64: 8, 128>}, {pipeline_mode = #tpu.pipeline_mode<synchronous>, transform_indices = @transform_1, window_bounds = array<i64: 128, 64>}, {pipeline_mode = #tpu.pipeline_mode<synchronous>, transform_indices = @transform_2, window_bounds = array<i64: 1, 64>}, {pipeline_mode = #tpu.pipeline_mode<synchronous>, transform_indices = @transform_3, window_bounds = array<i64: 64, 32>}, {pipeline_mode = #tpu.pipeline_mode<synchronous>, transform_indices = @transform_4, window_bounds = array<i64: 1, 32>}, {pipeline_mode = #tpu.pipeline_mode<synchronous>, transform_indices = @transform_5, window_bounds = array<i64: 32, 24>}, {pipeline_mode = #tpu.pipeline_mode<synchronous>, transform_indices = @transform_6, window_bounds = array<i64: 1, 24>}, {transform_indices = @transform_7, window_bounds = array<i64: 8, 24>}]} {
    %c0 = arith.constant 0 : index
    %c0_0 = arith.constant 0 : index
    %0 = vector.load %arg1[%c0, %c0_0] : memref<8x128xf32, #tpu.memory_space<vmem>>, vector<8x128xf32>
    %c0_1 = arith.constant 0 : index
    %c0_2 = arith.constant 0 : index
    %1 = vector.load %arg2[%c0_1, %c0_2] : memref<128x64xf32, #tpu.memory_space<vmem>>, vector<128x64xf32>
    %cst = arith.constant dense<0.000000e+00> : vector<8x64xf32>
    %2 = tpu.matmul %0, %1, %cst {dimension_numbers = #tpu.dot_dimension_numbers<[1], [0], [0], [1], [0, 0, 1, 1], [], []>} : vector<8x128xf32>, vector<128x64xf32>, vector<8x64xf32> -> vector<8x64xf32>
    %c0_3 = arith.constant 0 : index
    %c0_4 = arith.constant 0 : index
    %3 = vector.load %arg3[%c0_3, %c0_4] : memref<1x64xf32, #tpu.memory_space<vmem>>, vector<1x64xf32>
    %4 = vector.broadcast %3 : vector<1x64xf32> to vector<8x64xf32>
    %5 = arith.addf %2, %4 : vector<8x64xf32>
    %cst_5 = arith.constant 0.000000e+00 : f32
    %6 = vector.broadcast %cst_5 : f32 to vector<8x64xf32>
    %7 = arith.maximumf %5, %6 : vector<8x64xf32>
    %c0_6 = arith.constant 0 : index
    %c0_7 = arith.constant 0 : index
    %8 = vector.load %arg4[%c0_6, %c0_7] : memref<64x32xf32, #tpu.memory_space<vmem>>, vector<64x32xf32>
    %cst_8 = arith.constant dense<0.000000e+00> : vector<8x32xf32>
    %9 = tpu.matmul %7, %8, %cst_8 {dimension_numbers = #tpu.dot_dimension_numbers<[1], [0], [0], [1], [0, 0, 1, 1], [], []>} : vector<8x64xf32>, vector<64x32xf32>, vector<8x32xf32> -> vector<8x32xf32>
    %c0_9 = arith.constant 0 : index
    %c0_10 = arith.constant 0 : index
    %10 = vector.load %arg5[%c0_9, %c0_10] : memref<1x32xf32, #tpu.memory_space<vmem>>, vector<1x32xf32>
    %11 = vector.broadcast %10 : vector<1x32xf32> to vector<8x32xf32>
    %12 = arith.addf %9, %11 : vector<8x32xf32>
    %cst_11 = arith.constant 0.000000e+00 : f32
    %13 = vector.broadcast %cst_11 : f32 to vector<8x32xf32>
    %14 = arith.maximumf %12, %13 : vector<8x32xf32>
    %c0_12 = arith.constant 0 : index
    %c0_13 = arith.constant 0 : index
    %15 = vector.load %arg6[%c0_12, %c0_13] : memref<32x24xf32, #tpu.memory_space<vmem>>, vector<32x24xf32>
    %cst_14 = arith.constant dense<0.000000e+00> : vector<8x24xf32>
    %16 = tpu.matmul %14, %15, %cst_14 {dimension_numbers = #tpu.dot_dimension_numbers<[1], [0], [0], [1], [0, 0, 1, 1], [], []>} : vector<8x32xf32>, vector<32x24xf32>, vector<8x24xf32> -> vector<8x24xf32>
    %c0_15 = arith.constant 0 : index
    %c0_16 = arith.constant 0 : index
    %17 = vector.load %arg7[%c0_15, %c0_16] : memref<1x24xf32, #tpu.memory_space<vmem>>, vector<1x24xf32>
    %18 = vector.broadcast %17 : vector<1x24xf32> to vector<8x24xf32>
    %19 = arith.addf %16, %18 : vector<8x24xf32>
    %c0_17 = arith.constant 0 : index
    %c0_18 = arith.constant 0 : index
    %20 = vector.load %arg8[%c0_17, %c0_18] : memref<8x24xf32, #tpu.memory_space<vmem>>, vector<8x24xf32>
    tpu.vector_store %arg8[%c0_17, %c0_18], %19 {strides = array<i32>} : memref<8x24xf32, #tpu.memory_space<vmem>>, vector<8x24xf32>,
    return
  }
  func.func @transform_0(%arg0: i32) -> (i32, i32) {
    %c0_i32 = arith.constant 0 : i32
    %c0_i32_0 = arith.constant 0 : i32
    return %arg0, %c0_i32 : i32, i32
  }
  func.func @transform_1(%arg0: i32) -> (i32, i32) {
    %c0_i32 = arith.constant 0 : i32
    %c0_i32_0 = arith.constant 0 : i32
    %c0_i32_1 = arith.constant 0 : i32
    return %c0_i32, %c0_i32_0 : i32, i32
  }
  func.func @transform_2(%arg0: i32) -> (i32, i32) {
    %c0_i32 = arith.constant 0 : i32
    %c0_i32_0 = arith.constant 0 : i32
    %c0_i32_1 = arith.constant 0 : i32
    return %c0_i32, %c0_i32_0 : i32, i32
  }
  func.func @transform_3(%arg0: i32) -> (i32, i32) {
    %c0_i32 = arith.constant 0 : i32
    %c0_i32_0 = arith.constant 0 : i32
    %c0_i32_1 = arith.constant 0 : i32
    return %c0_i32, %c0_i32_0 : i32, i32
  }
  func.func @transform_4(%arg0: i32) -> (i32, i32) {
    %c0_i32 = arith.constant 0 : i32
    %c0_i32_0 = arith.constant 0 : i32
    %c0_i32_1 = arith.constant 0 : i32
    return %c0_i32, %c0_i32_0 : i32, i32
  }
  func.func @transform_5(%arg0: i32) -> (i32, i32) {
    %c0_i32 = arith.constant 0 : i32
    %c0_i32_0 = arith.constant 0 : i32
    %c0_i32_1 = arith.constant 0 : i32
    return %c0_i32, %c0_i32_0 : i32, i32
  }
  func.func @transform_6(%arg0: i32) -> (i32, i32) {
    %c0_i32 = arith.constant 0 : i32
    %c0_i32_0 = arith.constant 0 : i32
    %c0_i32_1 = arith.constant 0 : i32
    return %c0_i32, %c0_i32_0 : i32, i32
  }
  func.func @transform_7(%arg0: i32) -> (i32, i32) {
    %c0_i32 = arith.constant 0 : i32
    %c0_i32_0 = arith.constant 0 : i32
    return %arg0, %c0_i32 : i32, i32
  }
}

</mosaic_0001>

<bundles_post_ra>
// kernel: mlp_chord_classifier.1
= control target key start
LH: loop header
LB: loop body
LE: loop exit
PB: predicated region body
PF: predicated region fallthrough
CT: control target
= control target key end

     0   :  { %v439_v1 = vmov 0.0   ;;  %vm440_vm0 = vmmov 0   ;;  %s615_s0 = inlined_call_operand.vmem [shape: f32[8,128], index: 0, kind: input, shape index: {}]   ;;  %s616_s1 = inlined_call_operand.vmem [shape: f32[128,64], index: 1, kind: input, shape index: {}]   ;;  %s617_s2 = inlined_call_operand.vmem [shape: f32[1,64], index: 2, kind: input, shape index: {}]   ;;  %s618_s3 = inlined_call_operand.vmem [shape: f32[64,32], index: 3, kind: input, shape index: {}]   ;;  %s619_s4 = inlined_call_operand.vmem [shape: f32[1,32], index: 4, kind: input, shape index: {}]   ;;  %s620_s5 = inlined_call_operand.vmem [shape: f32[32,24], index: 5, kind: input, shape index: {}]   ;;  %s621_s6 = inlined_call_operand.vmem [shape: f32[1,24], index: 6, kind: input, shape index: {}]   ;;  %s622_s7 = inlined_call_operand.hbm [shape: f32[8,24], index: 7, kind: output, shape index: {}]  }
   0x1   :  { %v43_v0 = vld [vmem:[%s616_s1 + $0x78] sm:$0xff]  ;;  %349 = vmatprep.subr.mxu0 %v439_v1  ;;  %v42_v2 = vld [vmem:[%s616_s1 + $0x70] sm:$0xff]  ;;  %381 = vmatprep.mubr.msk.f32.mxu0 %vm440_vm0, %v439_v1  ;;  %v41_v3 = vld [vmem:[%s616_s1 + $0x68] sm:$0xff] }
   0x2   :  { %350 = vmatpush3.msra.mxu0 %v43_v0  ;;  %384 = vmatprep.subr.mxu1 %v439_v1  ;;  %v40_v4 = vld [vmem:[%s616_s1 + $0x60] sm:$0xff]  ;;  %v129_v5 = vld [vmem:[%s618_s3 + $0x38] sm:$0xff]  ;;  %v128_v6 = vld [vmem:[%s618_s3 + $0x30] sm:$0xff] }
   0x3   :  { %351 = vmatprep.subr.mxu0 %v439_v1  ;;  %400 = vmatprep.mubr.msk.f32.mxu1 %vm440_vm0, %v439_v1  ;;  %v39_v7 = vld [vmem:[%s616_s1 + $0x58] sm:$0xff]  ;;  %v127_v8 = vld [vmem:[%s618_s3 + $0x28] sm:$0xff] }
   0x4   :  { %352 = vmatpush3.msra.mxu0 %v42_v2  ;;  %385 = vmatpush3.msra.mxu1 %v129_v5 }
   0x5   :  { %353 = vmatprep.subr.mxu0 %v439_v1  ;;  %386 = vmatprep.subr.mxu1 %v439_v1 }
   0x6   :  { %354 = vmatpush3.msra.mxu0 %v41_v3 }
   0x7   :  { %355 = vmatprep.subr.mxu0 %v439_v1 }
   0x8   :  { %12 = vsyncpa [#allocation3], 0  ;;  %356 = vmatpush3.msra.mxu0 %v40_v4  ;;  %387 = vmatpush3.msra.mxu1 %v128_v6  ;;  %v38_v9 = vld [vmem:[%s616_s1 + $0x50] sm:$0xff]  ;;  %v126_v10 = vld [vmem:[%s618_s3 + $0x20] sm:$0xff]  ;;  %vm137_vm1 = vcmask 523264   ;;  %vm223_vm2 = vcmask 261120  }
   0x9   :  { %357 = vmatprep.subr.mxu0 %v439_v1  ;;  %388 = vmatprep.subr.mxu1 %v439_v1  ;;  %v37_v11 = vld [vmem:[%s616_s1 + $0x48] sm:$0xff]  ;;  %v125_v12 = vld [vmem:[%s618_s3 + $0x18] sm:$0xff]  ;;  %v36_v13 = vld [vmem:[%s616_s1 + $0x40] sm:$0xff]  ;;  %s441_s15 = smov [#allocation2]   ;;  %vm297_vm3 = vcmask 195584  }
   0xa   :  { %358 = vmatpush3.msra.mxu0 %v39_v7  ;;  %389 = vmatpush3.msra.mxu1 %v127_v8  ;;  %v35_v14 = vld [vmem:[%s616_s1 + $0x38] sm:$0xff]  ;;  %v34_v15 = vld [vmem:[%s616_s1 + $0x30] sm:$0xff]  ;;  %v33_v16 = vld [vmem:[%s616_s1 + $0x28] sm:$0xff]  ;;  %s305_s16 = sshll.u32 %s441_s15, 4  ;;  %s306_s16 = int_to_ptr.vmem [resolvable:$true] %s305_s16 }
   0xb   :  { %359 = vmatprep.subr.mxu0 %v439_v1  ;;  %390 = vmatprep.subr.mxu1 %v439_v1  ;;  %v32_v17 = vld [vmem:[%s616_s1 + $0x20] sm:$0xff]  ;;  %v31_v18 = vld [vmem:[%s616_s1 + $0x18] sm:$0xff]  ;;  %v30_v19 = vld [vmem:[%s616_s1 + $0x10] sm:$0xff]  ;;  %p422_p1 = scmp.lt.s32.totalorder %s306_s16, %s306_s16 }
   0xc   :  { %360 = vmatpush3.msra.mxu0 %v38_v9  ;;  %391 = vmatpush3.msra.mxu1 %v126_v10  ;;  %v29_v20 = vld [vmem:[%s616_s1 + $0x8] sm:$0xff]  ;;  %v28_v21 = vld [vmem:[%s616_s1] sm:$0xff]  ;;  %v124_v23 = vld [vmem:[%s618_s3 + $0x10] sm:$0xff] }
   0xd   :  { %361 = vmatprep.subr.mxu0 %v439_v1  ;;  %392 = vmatprep.subr.mxu1 %v439_v1  ;;  %v27_v22 = vld [vmem:[%s615_s0] sm:$0xff]  ;;  %v123_v24 = vld [vmem:[%s618_s3 + $0x8] sm:$0xff]  ;;  %v215_v31 = vld [vmem:[%s620_s5 + $0x18] sm:$0xff] }
   0xe   :  { %362 = vmatpush3.msra.mxu0 %v37_v11  ;;  %393 = vmatpush3.msra.mxu1 %v125_v12  ;;  %v122_v25 = vld [vmem:[%s618_s3] sm:$0xff]  ;;  %v214_v32 = vld [vmem:[%s620_s5 + $0x10] sm:$0xff]  ;;  %v213_v33 = vld [vmem:[%s620_s5 + $0x8] sm:$0xff] }
   0xf   :  { %363 = vmatprep.subr.mxu0 %v439_v1  ;;  %394 = vmatprep.subr.mxu1 %v439_v1  ;;  %v313_v26 = vld [vmem:[%s617_s2] ss:$0 sm:$0xff] }
  0x10   :  { %364 = vmatpush3.msra.mxu0 %v36_v13  ;;  %395 = vmatpush3.msra.mxu1 %v124_v23  ;;  %v212_v34 = vld [vmem:[%s620_s5] sm:$0xff]  ;;  %s417_s5 = scalar_lea.vmem %s306_s16, 128 }
  0x11   :  { %365 = vmatprep.subr.mxu0 %v439_v1  ;;  %396 = vmatprep.subr.mxu1 %v439_v1  ;;  %v314_v35 = vld [vmem:[%s619_s4] ss:$0 sm:$0xff]  ;;  %p418_p0 = scmp.ne.s32.totalorder %s306_s16, %s417_s5  ;;  %p423_p2 = scmp.lt.s32.totalorder %s417_s5, %s417_s5 }
  0x12   :  { %366 = vmatpush3.msra.mxu0 %v35_v14  ;;  %397 = vmatpush3.msra.mxu1 %v123_v24  ;;  %v316_v40 = vld [vmem:[%s621_s6] ss:$0 sm:$0xff] }
  0x13   :  { %367 = vmatprep.subr.mxu0 %v439_v1  ;;  %398 = vmatprep.subr.mxu1 %v439_v1  ;;  %p424_p3 = por %p423_p2, %p422_p1 }
  0x14   :  { %368 = vmatpush3.msra.mxu0 %v34_v15  ;;  %399 = vmatpush3.msra.mxu1 %v122_v25 }
  0x15   :  { %369 = vmatprep.subr.mxu0 %v439_v1  ;;  %403 = vmatprep.subr.mxu1 %v439_v1  ;;  %p425_p4 = pnand %p424_p3, %p418_p0 }
  0x16   :  { %370 = vmatpush3.msra.mxu0 %v33_v16 }
  0x17   :  { %371 = vmatprep.subr.mxu0 %v439_v1 }
  0x18   :  { %372 = vmatpush3.msra.mxu0 %v32_v17 }
  0x19   :  { %373 = vmatprep.subr.mxu0 %v439_v1 }
  0x1a   :  { %374 = vmatpush3.msra.mxu0 %v31_v18 }
  0x1b   :  { %375 = vmatprep.subr.mxu0 %v439_v1 }
  0x1c   :  { %376 = vmatpush3.msra.mxu0 %v30_v19 }
  0x1d   :  { %377 = vmatprep.subr.mxu0 %v439_v1 }
  0x1e   :  { %378 = vmatpush3.msra.mxu0 %v29_v20 }
  0x1f   :  { %379 = vmatprep.subr.mxu0 %v439_v1 }
  0x20   :  { %380 = vmatpush3.msra.mxu0 %v28_v21 }
  0x21   :  { %382 = vmatmul.mubr.f32.vlgmr.msra.gmra.mxu0 %v27_v22 }
  0xe1   :  { %v117_v27 = vpop.f32.mrf.mxu0 }
  0xe2   :  { %v118_v28 = vadd.f32 %v313_v26, %v117_v27 }
  0xe3   :  { %v383_v29 = vpop.f32.mrf.mxu0 }
  0xe4   :  { %v121_v30 = vmax.f32 %v118_v28, 0.0 }
  0xe6   :  { %401 = vmatmul.mubr.msk.f32.vlgmr.msra.gmra.mxu1 %vm137_vm1, %v121_v30 }
  0xe7   :  { %404 = vmatpush3.msra.mxu1 %v215_v31  ;;  %411 = vmatprep.mubr.msk.f32.mxu1 %vm440_vm0, %v439_v1 }
  0xe8   :  { %405 = vmatprep.subr.mxu1 %v439_v1 }
  0xe9   :  { %406 = vmatpush3.msra.mxu1 %v214_v32 }
  0xea   :  { %407 = vmatprep.subr.mxu1 %v439_v1 }
  0xeb   :  { %408 = vmatpush3.msra.mxu1 %v213_v33 }
  0xec   :  { %409 = vmatprep.subr.mxu1 %v439_v1 }
  0xed   :  { %410 = vmatpush3.msra.mxu1 %v212_v34 }
 0x1a6   :  { %v207_v36 = vpop.f32.mrf.mxu1 }
 0x1a7   :  { %v208_v37 = vadd.f32 %v314_v35, %v207_v36 }
 0x1a8   :  { %v402_v38 = vpop.f32.mrf.mxu1 }
 0x1a9   :  { %v211_v39 = vmax.f32 %v208_v37, 0.0 }
 0x1ab   :  { %412 = vmatmul.mubr.msk.f32.vlgmr.msra.gmra.mxu1 %vm223_vm2, %v211_v39 }
 0x26b   :  { %v293_v41 = vpop.f32.mrf.mxu1 }
 0x26c   :  { %v294_v42 = vadd.f32 %v316_v40, %v293_v41 }
 0x26d   :  { %v413_v43 = vpop.f32.mrf.mxu1 }
 0x26e   :  { %298 = vst.msk [vmem:[#allocation2] sm:$0xff] %vm297_vm3, %v294_v42 }
 0x26f   :  { %428 = shalt.err (!%p425_p4)
}
 0x270   :  { %308 = dma.vmem_to_hbm [thread:$0]  %s306_s16, 128, %s622_s7, [#allocation3]  }
 0x271   :  { %437 = dma.done.wait [#allocation3], 128  }
 0x272   :  { %438 = vsyncadd [#allocation3], 4294967168 }
 0x273   :  { %312 = vsyncpa [#allocation3], 1 }

</bundles_post_ra>
